<compile_context>
chip_gen: v5e
topology: v5e:2x2
jax: 0.10.0
libtpu: 0.0.40
codegen_flags: <defaults>
</compile_context>

<pallas_src>
import functools

import jax
import jax.numpy as jnp
from jax.experimental import pallas as pl
from jax.experimental.pallas import tpu as pltpu

THRESHOLD = 0.6                      # Recognizer(threshold=0.6)
EMBED_DIM = 512                      # InceptionResnetV1 embedding size
_MB = 1024 * 1024
_TARGET_W_TILE_BYTES = 8 * _MB       # target bf16 weight tile (amortizes per-step cost)


def _round_up(x, m):
    return ((x + m - 1) // m) * m


def _cdiv(a, b):
    return -(-a // b)


def _vmem_capacity_bytes():
    """Per-core VMEM capacity; conservative 64 MiB (v7x) fallback."""
    try:
        return int(pltpu.get_tpu_info().vmem_capacity_bytes)
    except Exception:
        return 64 * _MB


# ---------------------------------------------------------------------------
# Kernels
# ---------------------------------------------------------------------------
def embed_matmul_kernel(xy_ref, w_ref, bias_ref, emb_ref, acc_ref):
    """One (n, k) grid step of (2B, K) @ (K, E) with folded bias.

    grid = (n_tiles, k_steps); N is 'parallel' (megacore-shardable on v7x),
    K (reduction) is last and 'arbitrary'.  The f32 accumulator is initialized
    with the folded bias at k == 0 (no epilogue add) and written at k == last.

    xy_ref  : (2B, tk) bf16  — x rows stacked over y rows (Normalize folded away)
    w_ref   : (tk, tn) bf16  — folded weights
    bias_ref: (1, tn)  f32   — folded bias
    emb_ref : (2B, tn) f32   — embedding output tile
    acc_ref : (2B, tn) f32   — VMEM accumulator (persists across K)
    """
    k = pl.program_id(1)

    @pl.when(k == 0)
    def _():
        acc_ref[...] = jnp.broadcast_to(bias_ref[...], acc_ref.shape)

    acc_ref[...] += jnp.dot(xy_ref[...], w_ref[...],
                            preferred_element_type=jnp.float32)

    @pl.when(k == pl.num_programs(1) - 1)
    def _():
        emb_ref[...] = acc_ref[...]


def embed_matmul_single_k_kernel(xy_ref, w_ref, bias_ref, emb_ref):
    """Fast path when all of K fits one tile: no scratch read-modify-write."""
    emb_ref[...] = bias_ref[...] + jnp.dot(xy_ref[...], w_ref[...],
                                           preferred_element_type=jnp.float32)


def cosine_kernel(emb_ref, sim_ref):
    """L2-normalize each embedding row and take the pairwise dot product.

    emb_ref : (2B, E)  f32 — x embeddings stacked over y embeddings
    sim_ref : (B, 128) f32 — similarity broadcast across lanes (lane-dense store)
    """
    emb = emb_ref[...]
    # F.normalize(p=2, dim=1, eps=1e-12): x / max(||x||, eps)
    sumsq = jnp.sum(emb * emb, axis=1, keepdims=True)
    emb = emb * jax.lax.rsqrt(jnp.maximum(sumsq, 1e-24))
    b = sim_ref.shape[0]
    # cosine similarity of unit vectors reduces to a dot product
    sim = jnp.sum(emb[:b, :] * emb[b:, :], axis=1, keepdims=True)     # (B, 1)
    sim_ref[...] = jnp.broadcast_to(sim, sim_ref.shape)


# ---------------------------------------------------------------------------
# Tiling plan + one-time parameter folding
# ---------------------------------------------------------------------------
def plan_tiles(d_in, embed_dim=EMBED_DIM, *, batch=2, tk=None,
               target_tile_bytes=_TARGET_W_TILE_BYTES):
    """Choose (d_pad, tk, k_steps, tn, n_tiles).

    * K is padded only to a multiple of 128, then tk divides d_pad exactly
      (extra padding <= (k_steps-1)*128 columns).
    * tk targets an ~8 MiB bf16 weight tile and is clamped to the queried
      (generation-specific) VMEM budget.
    * E is split into two N tiles when possible so the 'parallel' axis can be
      sharded across both TensorCores on v7x.
    """
    two_b = 2 * batch
    n_tiles = 2 if (embed_dim % 256 == 0 and embed_dim >= 256) else 1
    tn = embed_dim // n_tiles

    d128 = _round_up(d_in, 128)
    d_units = d128 // 128

    if tk is None:
        tk_units_target = max(1, target_tile_bytes // (tn * 2 * 128))
    else:
        tk_units_target = max(1, _round_up(int(tk), 128) // 128)

    # Clamp so the double-buffered streams fit the scoped-VMEM budget
    # (64 MiB chip VMEM on v7x vs 128 MiB on v5e/v6e).
    budget = (3 * _vmem_capacity_bytes()) // 4
    fixed = 2 * (tn * 4) + 2 * (two_b * tn * 4) + two_b * tn * 4
    per_unit = 2 * 128 * (tn * 2 + two_b * 2)
    max_tk_units = max(1, (budget - fixed) // per_unit)
    tk_units_target = min(tk_units_target, max_tk_units)

    k_steps = max(1, _cdiv(d_units, tk_units_target))
    tk_units = _cdiv(d_units, k_steps)
    tk_final = tk_units * 128
    d_pad = tk_final * k_steps
    return d_pad, tk_final, k_steps, tn, n_tiles


def prepare_recognizer_params(w, b, gamma, beta, running_mean, running_var,
                              *, eps=1e-3, d_pad):
    """Fold transforms.Normalize(0.5, 0.5) + linear + eval-mode BatchNorm1d.

    eval BN:  y = (z - mean) / sqrt(var + eps) * gamma + beta,  z = (2x-1) @ W + b
       =>     y = x @ (2 * W * g_eff) + g_eff * (b - sum_k W - mean) + beta,
              g_eff = gamma / sqrt(var + eps)

    Returns the zero-padded bf16 weight (d_pad, E) and f32 bias (1, E).  Call
    ONCE and reuse — this keeps the weight-size HBM round-trips out of the
    per-call path (the bias fold uses the original unpadded f32 W).
    """
    g_eff = gamma / jnp.sqrt(running_var + eps)                       # (1, E)
    w_folded = (2.0 * w) * g_eff                                      # (D_in, E)
    bias = g_eff * (b - jnp.sum(w, axis=0, keepdims=True) - running_mean) + beta
    d_in = w.shape[0]
    w_bf = w_folded.astype(jnp.bfloat16)
    if d_pad > d_in:
        w_bf = jnp.pad(w_bf, ((0, d_pad - d_in), (0, 0)))
    return w_bf, bias.astype(jnp.float32)


def _default_vmem_limit(two_b, tk, tn):
    budget = (3 * _vmem_capacity_bytes()) // 4
    need = (2 * (two_b * tk * 2)      # xy double-buffer (bf16)
            + 2 * (tk * tn * 2)       # weight double-buffer (bf16)
            + 2 * (tn * 4)            # bias double-buffer (f32)
            + 2 * (two_b * tn * 4)    # output double-buffer (f32)
            + two_b * tn * 4)         # accumulator scratch (f32)
    return int(min(budget, max(32 * _MB, need + 4 * _MB)))


# ---------------------------------------------------------------------------
# Forward
# ---------------------------------------------------------------------------
def recognizer_forward(x_img, y_img, w_bf, bias, *, plan,
                       threshold=THRESHOLD, vmem_limit_bytes=None):
    """x_img, y_img: (B, C, H, W) float32 in [0, 1] (post-ToTensor).

    w_bf / bias come from prepare_recognizer_params (computed once).  Batch
    many pairs per call to amortize the (D_in, 512) weight stream.
    """
    d_pad, tk, k_steps, tn, n_tiles = plan
    B = x_img.shape[0]
    d_in = int(x_img.shape[1] * x_img.shape[2] * x_img.shape[3])
    E = w_bf.shape[1]
    two_b = 2 * B

    # Single (2B, D) operand, bf16 streaming (activation bytes << weight bytes).
    xy = jnp.concatenate(
        [x_img.reshape(B, d_in), y_img.reshape(B, d_in)], axis=0
    ).astype(jnp.bfloat16)
    if d_pad > d_in:
        xy = jnp.pad(xy, ((0, 0), (0, d_pad - d_in)))

    if vmem_limit_bytes is None:
        vmem_limit_bytes = _default_vmem_limit(two_b, tk, tn)

    if k_steps == 1:
        # No-K-loop fast path: single block per N tile, no accumulator RMW.
        emb = pl.pallas_call(
            embed_matmul_single_k_kernel,
            out_shape=jax.ShapeDtypeStruct((two_b, E), jnp.float32),
            grid_spec=pltpu.PrefetchScalarGridSpec(
                num_scalar_prefetch=0,
                grid=(n_tiles,),
                in_specs=[
                    pl.BlockSpec((two_b, d_pad), lambda n: (0, 0)),
                    pl.BlockSpec((d_pad, tn), lambda n: (0, n)),
                    pl.BlockSpec((1, tn), lambda n: (0, n)),
                ],
                out_specs=pl.BlockSpec((two_b, tn), lambda n: (0, n)),
            ),
            compiler_params=pltpu.CompilerParams(
                dimension_semantics=("parallel",),
                vmem_limit_bytes=vmem_limit_bytes),
        )(xy, w_bf, bias)
    else:
        emb = pl.pallas_call(
            embed_matmul_kernel,
            out_shape=jax.ShapeDtypeStruct((two_b, E), jnp.float32),
            grid_spec=pltpu.PrefetchScalarGridSpec(
                num_scalar_prefetch=0,
                grid=(n_tiles, k_steps),                     # reduction axis last
                in_specs=[
                    pl.BlockSpec((two_b, tk), lambda n, k: (0, k)),   # activations
                    pl.BlockSpec((tk, tn), lambda n, k: (k, n)),      # folded weights
                    pl.BlockSpec((1, tn), lambda n, k: (0, n)),       # folded bias
                ],
                out_specs=pl.BlockSpec((two_b, tn), lambda n, k: (0, n)),
                scratch_shapes=[pltpu.VMEM((two_b, tn), jnp.float32)],
            ),
            compiler_params=pltpu.CompilerParams(
                dimension_semantics=("parallel", "arbitrary"),
                vmem_limit_bytes=vmem_limit_bytes),
        )(xy, w_bf, bias)

    # Tiny epilogue kernel (needs the full E-wide embedding): L2-normalize +
    # pairwise cosine; lane-dense (B, 128) output, sliced in the wrapper.
    sim = pl.pallas_call(
        cosine_kernel,
        out_shape=jax.ShapeDtypeStruct((B, 128), jnp.float32),
    )(emb)

    similarity = sim[:, 0]                    # (B,) f32, matches F.cosine_similarity
    same_person = similarity >= threshold     # (B,) bool
    return same_person, similarity


# ---------------------------------------------------------------------------
# Demo / self-check
# ---------------------------------------------------------------------------
if __name__ == "__main__":
    key = jax.random.PRNGKey(0)
    k_x, k_y, k_w, k_g, k_bt, k_m, k_v = jax.random.split(key, 7)

    # small shapes: batch=2, channels=3, spatial=16 (post-ToTensor range [0, 1])
    B, C, H, W = 2, 3, 16, 16
    D_in = C * H * W                           # 768

    x_img = jax.random.uniform(k_x, (B, C, H, W), dtype=jnp.float32)
    y_img = jax.random.uniform(k_y, (B, C, H, W), dtype=jnp.float32)

    # deterministic synthetic parameters for the embedding head
    w = 0.02 * jax.random.normal(k_w, (D_in, EMBED_DIM), dtype=jnp.float32)
    b = jnp.zeros((1, EMBED_DIM), dtype=jnp.float32)      # facenet last_linear: bias=False
    gamma = 1.0 + 0.01 * jax.random.normal(k_g, (1, EMBED_DIM), dtype=jnp.float32)
    beta = 0.01 * jax.random.normal(k_bt, (1, EMBED_DIM), dtype=jnp.float32)
    running_mean = 0.01 * jax.random.normal(k_m, (1, EMBED_DIM), dtype=jnp.float32)
    running_var = 1.0 + 0.1 * jax.random.uniform(k_v, (1, EMBED_DIM), dtype=jnp.float32)
    BN_EPS = 1e-3

    # ---- pure-JAX f32 reference (same fold algebra, no bf16) ---------------
    def reference(xi, yi):
        g_eff = gamma / jnp.sqrt(running_var + BN_EPS)

        def embed(img):
            z = (2.0 * img.reshape(B, D_in) - 1.0) @ w + b
            e = g_eff * (z - running_mean) + beta
            return e / jnp.maximum(jnp.linalg.norm(e, axis=1, keepdims=True), 1e-12)

        ex, ey = embed(xi), embed(yi)
        return jnp.sum(ex * ey, axis=1)

    sim_gold = reference(x_img, y_img)

    # ---- fast path: whole K fits one tile (k_steps == 1) -------------------
    plan_fast = plan_tiles(D_in, EMBED_DIM, batch=B)
    w_bf, bias = prepare_recognizer_params(
        w, b, gamma, beta, running_mean, running_var, eps=BN_EPS,
        d_pad=plan_fast[0])
    fwd_fast = jax.jit(functools.partial(recognizer_forward, plan=plan_fast))
    same_fast, sim_fast = fwd_fast(x_img, y_img, w_bf, bias)

    # ---- K-tiled / double-buffered path (tk=256 -> grid (2, 3)) ------------
    plan_tiled = plan_tiles(D_in, EMBED_DIM, batch=B, tk=256)
    w_bf2, bias2 = prepare_recognizer_params(
        w, b, gamma, beta, running_mean, running_var, eps=BN_EPS,
        d_pad=plan_tiled[0])
    fwd_tiled = jax.jit(functools.partial(recognizer_forward, plan=plan_tiled))
    same_tiled, sim_tiled = fwd_tiled(x_img, y_img, w_bf2, bias2)

    jax.block_until_ready((same_fast, sim_fast, same_tiled, sim_tiled))

    # loose tolerance: weights/activations stream as bf16 (accumulation in f32)
    assert jnp.max(jnp.abs(sim_fast - sim_gold)) < 5e-2
    assert jnp.max(jnp.abs(sim_tiled - sim_gold)) < 5e-2
    assert jnp.max(jnp.abs(sim_fast - sim_tiled)) < 5e-2
    print("KERNEL_OK")
</pallas_src>

<mosaic_0001>
module attributes {stable_mosaic.version = 11 : i64} {
  func.func @embed_matmul_single_k_kernel(%arg0: i32, %arg1: memref<4x768xbf16, #tpu.memory_space<vmem>>, %arg2: memref<768x256xbf16, #tpu.memory_space<vmem>>, %arg3: memref<1x256xf32, #tpu.memory_space<vmem>>, %arg4: memref<4x256xf32, #tpu.memory_space<vmem>>) attributes {dimension_semantics = [#tpu.dimension_semantics<parallel>], iteration_bounds = array<i64: 2>, scalar_prefetch = 0 : i64, scratch_operands = 0 : i64, tpu.core_type = #tpu.core_type<tc>, window_params = [{pipeline_mode = #tpu.pipeline_mode<synchronous>, transform_indices = @transform_0, window_bounds = array<i64: 4, 768>}, {transform_indices = @transform_1, window_bounds = array<i64: 768, 256>}, {transform_indices = @transform_2, window_bounds = array<i64: 1, 256>}, {transform_indices = @transform_3, window_bounds = array<i64: 4, 256>}]} {
    %c0 = arith.constant 0 : index
    %c0_0 = arith.constant 0 : index
    %0 = vector.load %arg3[%c0, %c0_0] : memref<1x256xf32, #tpu.memory_space<vmem>>, vector<1x256xf32>
    %c0_1 = arith.constant 0 : index
    %c0_2 = arith.constant 0 : index
    %1 = vector.load %arg1[%c0_1, %c0_2] : memref<4x768xbf16, #tpu.memory_space<vmem>>, vector<4x768xbf16>
    %c0_3 = arith.constant 0 : index
    %c0_4 = arith.constant 0 : index
    %2 = vector.load %arg2[%c0_3, %c0_4] : memref<768x256xbf16, #tpu.memory_space<vmem>>, vector<768x256xbf16>
    %cst = arith.constant dense<0.000000e+00> : vector<4x256xf32>
    %3 = tpu.matmul %1, %2, %cst {dimension_numbers = #tpu.dot_dimension_numbers<[1], [0], [0], [1], [0, 0, 1, 1], [], []>} : vector<4x768xbf16>, vector<768x256xbf16>, vector<4x256xf32> -> vector<4x256xf32>
    %4 = vector.broadcast %0 : vector<1x256xf32> to vector<4x256xf32>
    %5 = arith.addf %4, %3 : vector<4x256xf32>
    %c0_5 = arith.constant 0 : index
    %c0_6 = arith.constant 0 : index
    %6 = vector.load %arg4[%c0_5, %c0_6] : memref<4x256xf32, #tpu.memory_space<vmem>>, vector<4x256xf32>
    tpu.vector_store %arg4[%c0_5, %c0_6], %5 {strides = array<i32>} : memref<4x256xf32, #tpu.memory_space<vmem>>, vector<4x256xf32>,
    return
  }
  func.func @transform_0(%arg0: i32) -> (i32, i32) {
    %c0_i32 = arith.constant 0 : i32
    %c0_i32_0 = arith.constant 0 : i32
    %c0_i32_1 = arith.constant 0 : i32
    return %c0_i32, %c0_i32_0 : i32, i32
  }
  func.func @transform_1(%arg0: i32) -> (i32, i32) {
    %c0_i32 = arith.constant 0 : i32
    %c0_i32_0 = arith.constant 0 : i32
    return %c0_i32, %arg0 : i32, i32
  }
  func.func @transform_2(%arg0: i32) -> (i32, i32) {
    %c0_i32 = arith.constant 0 : i32
    %c0_i32_0 = arith.constant 0 : i32
    return %c0_i32, %arg0 : i32, i32
  }
  func.func @transform_3(%arg0: i32) -> (i32, i32) {
    %c0_i32 = arith.constant 0 : i32
    %c0_i32_0 = arith.constant 0 : i32
    return %c0_i32, %arg0 : i32, i32
  }
}

module attributes {stable_mosaic.version = 11 : i64} {
  func.func @cosine_kernel(%arg0: memref<4x512xf32, #tpu.memory_space<vmem>>, %arg1: memref<2x128xf32, #tpu.memory_space<vmem>>) attributes {dimension_semantics = [], scalar_prefetch = 0 : i64, scratch_operands = 0 : i64, tpu.core_type = #tpu.core_type<tc>} {
    %c0 = arith.constant 0 : index
    %c0_0 = arith.constant 0 : index
    %0 = vector.load %arg0[%c0, %c0_0] : memref<4x512xf32, #tpu.memory_space<vmem>>, vector<4x512xf32>
    %1 = arith.mulf %0, %0 : vector<4x512xf32>
    %cst = arith.constant dense<0.000000e+00> : vector<4xf32>
    %2 = vector.multi_reduction <add>, %1, %cst [1] : vector<4x512xf32> to vector<4xf32>
    %3 = vector.shape_cast %2 : vector<4xf32> to vector<4x1xf32>
    %cst_1 = arith.constant 1.000000e-24 : f32
    %4 = vector.broadcast %cst_1 : f32 to vector<4x1xf32>
    %5 = arith.maximumf %3, %4 : vector<4x1xf32>
    %6 = math.rsqrt %5 : vector<4x1xf32>
    %7 = vector.broadcast %6 : vector<4x1xf32> to vector<4x512xf32>
    %8 = arith.mulf %0, %7 : vector<4x512xf32>
    %9 = vector.extract_strided_slice %8 {offsets = [0, 0], sizes = [2, 512], strides = [1, 1]} : vector<4x512xf32> to vector<2x512xf32>
    %10 = vector.extract_strided_slice %8 {offsets = [2, 0], sizes = [2, 512], strides = [1, 1]} : vector<4x512xf32> to vector<2x512xf32>
    %11 = arith.mulf %9, %10 : vector<2x512xf32>
    %cst_2 = arith.constant dense<0.000000e+00> : vector<2xf32>
    %12 = vector.multi_reduction <add>, %11, %cst_2 [1] : vector<2x512xf32> to vector<2xf32>
    %13 = vector.shape_cast %12 : vector<2xf32> to vector<2x1xf32>
    %14 = vector.shape_cast %13 : vector<2x1xf32> to vector<2x1xf32>
    %15 = vector.broadcast %14 : vector<2x1xf32> to vector<2x128xf32>
    %c0_3 = arith.constant 0 : index
    %c0_4 = arith.constant 0 : index
    %16 = vector.load %arg1[%c0_3, %c0_4] : memref<2x128xf32, #tpu.memory_space<vmem>>, vector<2x128xf32>
    tpu.vector_store %arg1[%c0_3, %c0_4], %15 {strides = array<i32>} : memref<2x128xf32, #tpu.memory_space<vmem>>, vector<2x128xf32>,
    return
  }
}

</mosaic_0001>

<bundles_post_ra>
// kernel: recognizer_forward.3
= control target key start
LH: loop header
LB: loop body
LE: loop exit
PB: predicated region body
PF: predicated region fallthrough
CT: control target
= control target key end

     0   :  { %vm25_vm0 = vcmask 1043456   ;;  %v97_v20 = vmov 839922192   ;;  %vm77_vm4 = vcmask 1041408   ;;  %s117_s0 = inlined_call_operand.vmem [shape: f32[4,512], index: 0, kind: input, shape index: {}]   ;;  %s118_s1 = inlined_call_operand.vmem [shape: f32[2,128], index: 1, kind: output, shape index: {}]  }
   0x1   :  { %v8_v0 = vld [vmem:[%s117_s0] sm:$0xff]  ;;  %v9_v1 = vld [vmem:[%s117_s0 + $0x8] sm:$0xff]  ;;  %v48_v21 = vunpack.c.l.s4 %v97_v20 }
   0x2   :  { %v10_v2 = vmul.f32 %v8_v0, %v8_v0  ;;  %v11_v3 = vmul.f32 %v9_v1, %v9_v1 }
   0x3   :  { %v49_v24 = vunpack.c.0.s8 %v48_v21 }
   0x4   :  { %14 = vst [vmem:[#allocation1] ss:$2 sm:$0xff] %v10_v2 }
   0x5   :  { %16 = vst [vmem:[#allocation1 + $0x10] ss:$2 sm:$0xff] %v11_v3 }
   0xb   :  { %v17_v4 = vld.sshfl [vmem:[#allocation1] sm:$0xff pattern:$0x75316420]  ;;  %v18_v5 = vld.sshfl [vmem:[#allocation1 + $0x8] sm:$0xff pattern:$0x75316420] }
   0xc   :  { %v19_v6 = vld.sshfl [vmem:[#allocation1 + $0x10] sm:$0xff pattern:$0x75316420]  ;;  %v20_v7 = vld.sshfl [vmem:[#allocation1 + $0x18] sm:$0xff pattern:$0x75316420] }
   0xd   :  { %v26_v8 = vsel %vm25_vm0, %v17_v4, 0.0  ;;  %v27_v9 = vsel %vm25_vm0, %v18_v5, 0.0  ;;  %v29_v10 = vsel %vm25_vm0, %v19_v6, 0.0  ;;  %v31_v12 = vsel %vm25_vm0, %v20_v7, 0.0 }
   0xe   :  { %v28_v11 = vadd.f32 %v27_v9, %v26_v8 }
  0x10   :  { %v30_v13 = vadd.f32 %v29_v10, %v28_v11 }
  0x12   :  { %v32_v14 = vadd.f32 %v31_v12, %v30_v13 }
  0x14   :  { %33 = vadd.xlane.f32.xlu0 %v32_v14 }
  0x87   :  { %v34_v15 = vpop.xlane.xlu0 %33 }
  0x88   :  { %v35_v16 = vmax.f32 %v34_v15, 1e-24 }
  0x8a   :  { %95 = vrsqrt.f32 %v35_v16  ;;  %vm42_vm2 = vweird.f32 %v35_v16 }
  0x90   :  { %v96_v17 = vpop.eup %95 }
  0x91   :  { %v37_v18 = vmul.f32 %v96_v17, %v35_v16  ;;  %vm43_vm1 = vweird.f32 %v96_v17 }
  0x92   :  { %vm44_vm3 = vmor %vm42_vm2, %vm43_vm1 }
  0x93   :  { %v38_v19 = vmul.f32 %v96_v17, %v37_v18 }
  0x95   :  { %v39_v22 = vmul.f32 0.5, %v38_v19 }
  0x97   :  { %v40_v23 = vsub.f32 1.5, %v39_v22 }
  0x99   :  { %v41_v25 = vmul.f32 %v96_v17, %v40_v23 }
  0x9b   :  { %v45_v26 = vsel %vm44_vm3, %v96_v17, %v41_v25 }
  0x9c   :  { %v50_v27 = vperm.slane %v45_v26, %v49_v24 }
  0x9e   :  { %v52_v28 = vmul.f32 %v50_v27, %v8_v0  ;;  %v53_v29 = vmul.f32 %v50_v27, %v9_v1 }
  0xa0   :  { %v92_v30 = vrot.slane %v52_v28, 10  ;;  %v93_v31 = vrot.slane %v53_v29, 10 }
  0xa2   :  { %v62_v32 = vmul.f32 %v92_v30, %v52_v28  ;;  %v63_v33 = vmul.f32 %v93_v31, %v53_v29 }
  0xa4   :  { %66 = vst [vmem:[#allocation1] ss:$2 sm:$0xff] %v62_v32 }
  0xa5   :  { %68 = vst [vmem:[#allocation1 + $0x10] ss:$2 sm:$0xff] %v63_v33 }
  0xab   :  { %v69_v34 = vld.sshfl [vmem:[#allocation1] sm:$0xff pattern:$0x75316420]  ;;  %v70_v35 = vld.sshfl [vmem:[#allocation1 + $0x8] sm:$0xff pattern:$0x75316420] }
  0xac   :  { %v71_v36 = vld.sshfl [vmem:[#allocation1 + $0x10] sm:$0xff pattern:$0x75316420]  ;;  %v78_v37 = vsel %vm77_vm4, %v69_v34, 0.0  ;;  %v79_v38 = vsel %vm77_vm4, %v70_v35, 0.0 }
  0xad   :  { %v72_v39 = vld.sshfl [vmem:[#allocation1 + $0x18] sm:$0xff pattern:$0x75316420]  ;;  %v80_v40 = vadd.f32 %v79_v38, %v78_v37  ;;  %v81_v41 = vsel %vm77_vm4, %v71_v36, 0.0 }
  0xae   :  { %v83_v43 = vsel %vm77_vm4, %v72_v39, 0.0 }
  0xaf   :  { %v82_v42 = vadd.f32 %v81_v41, %v80_v40 }
  0xb1   :  { %v84_v44 = vadd.f32 %v83_v43, %v82_v42 }
  0xb3   :  { %85 = vadd.xlane.f32.xlu0 %v84_v44 }
 0x126   :  { %v86_v45 = vpop.xlane.xlu0 %85 }
 0x127   :  { %87 = vst [vmem:[%s118_s1] sm:$0x3] %v86_v45 }

// kernel: recognizer_forward.2
= control target key start
LH: loop header
LB: loop body
LE: loop exit
PB: predicated region body
PF: predicated region fallthrough
CT: control target
= control target key end

     0   :  { %8 = vsyncpa [#allocation3], 0  ;;  %s1992_s0 = inlined_call_operand.vmem [shape: bf16[4,768], index: 0, kind: input, shape index: {}]   ;;  %s1993_s1 = inlined_call_operand.hbm [shape: bf16[768,512], index: 1, kind: input, shape index: {}]   ;;  %s1994_s2 = inlined_call_operand.vmem [shape: f32[1,512], index: 2, kind: input, shape index: {}]   ;;  %s1995_s3 = inlined_call_operand.vmem [shape: f32[4,512], index: 3, kind: output, shape index: {}]  }
   0x1   :  { %10 = vsyncpa [#allocation3 + $0x1], 0  ;;  %s1682_s12 = smov 0   ;;  %s1684_s13 = smov 0  }
   0x2   :  { %s1686_s14 = smov 0   ;;  %s1688_s15 = smov 0  }
   0x3 LB: > { %s1056_s16 = sadd.s32 4294967295, %s1657_s15   ;;  %s1702_s17 = sadd.s32 1, %s1657_s15   ;;  %s1657_s15 = sphi %s1688_s15, %s2001_s15   ;;  %s1653_s14 = sphi %s1686_s14, %s2000_s14   ;;  %s1649_s13 = sphi %s1684_s13, %s1999_s13   ;;  %s1645_s12 = sphi %s1682_s12, %s1998_s12  }
   0x4   : > { %s41_s18 = ssub.s32 %s1657_s15, %s1702_s17  ;;  %s44_s19 = sadd.s32 1, %s1653_s14 }
   0x5   : > { %p42_p0 = scmp.eq.s32.totalorder %s41_s18, 0  ;;  %p51_p1 = scmp.ne.s32.totalorder %s1653_s14, %s1649_s13 }
   0x6   : > { %p52_p2 = scmp.eq.s32.totalorder %s1657_s15, 0  ;;  %p57_p3 = scmp.ne.s32.totalorder %s1649_s13, %s1645_s12 }
   0x7   : > { %s1712_s20 = scalar_select %p42_p0, %s1653_s14, %s44_s19  }
   0x8   : > { %p53_p4 = por %p52_p2, %p51_p1  ;;  %p58_p5 = scmp.eq.s32.totalorder %s1056_s16, 0 }
   0x9   : > { %p1557_p6 = scmp.lt.s32.totalorder %s1657_s15, 2  ;;  %s136_s22 = sand.u32 1, %s1653_s14  }
   0xa   : > { %p1717_p7 = por %p58_p5, %p57_p3  ;;  %s1549_s23 = smul.u32 768, %s136_s22 }
   0xb   : > { %s1452_s24 = sshll.u32 %s1657_s15, 3  ;;  %p1723_p8 = pnand %p1557_p6, %p53_p4 }
   0xc   : > { %s145_s28 = scalar_lea.hbm %s1993_s1, %s1452_s24  ;;  %s140_s30 = scalar_lea.vmem [#allocation2], %s1549_s23 }
   0xd   : > { %s146_s29 = sshll.u32 %s145_s28, 4  ;;  %s148_s4 = sshll.u32 %s140_s30, 4  ;;  %s147_s29 = int_to_ptr.hbm [resolvable:$true] %s146_s29  ;;  %s149_s4 = int_to_ptr.vmem [resolvable:$true] %s148_s4 }
   0xe   : > { %s137_s5 = scalar_lea.sflag [#allocation3], %s136_s22  ;;  %s1593_s6 = sshra.s32 %s147_s29, 4  ;;  %s1594_s6 = int_to_ptr.hbm [resolvable:$true] %s1593_s6 }
   0xf   : > { %s1595_s7 = scalar_lea.hbm %s1594_s6, 768  ;;  %p1597_p10 = pneg %p1723_p8 }
  0x10   : > { %p1596_p9 = scmp.ne.s32.totalorder %s1594_s6, %s1595_s7  ;;  %s1600_s10 = scalar_lea.hbm %s1993_s1, 1536 }
  0x11   : > { %p1601_p13 = scmp.lt.s32.totalorder %s1594_s6, %s1993_s1  ;;  %p1602_p0 = scmp.lt.s32.totalorder %s1600_s10, %s1595_s7 }
  0x12   : > { %p1598_p11 = pnand %p1597_p10, %p1596_p9 }
  0x13   : > { %p1603_p1 = por %p1602_p0, %p1601_p13 }
  0x14   : > { %p1599_p12 = pneg %p1598_p11 }
  0x16   : > { %p1604_p2 = pnand %p1603_p1, %p1599_p12 }
  0x18   : > { %1607 = shalt.err (!%p1604_p2)
}
  0x19   : > { %s1659_s18 = smov 256   ;;  %s1660_s19 = smov 128  }
  0x1a   : > { %s1661_s22 = smov 8   ;;  %p1062_p3 = scmp.ge.s32.totalorder %s1657_s15, 1 }
  0x1b   : > { %1556 = dma.hbm_to_vmem [thread:$0]  (!%p1723_p8), %s147_s29, 12288, %s149_s4, %s137_s5, %s1659_s18, %s1660_s19, %s1661_s22  }
  0x1c   : > { %p164_p4 = scmp.lt.s32.totalorder %s1657_s15, 3 }
  0x1e   : > { %p165_p5 = pnand %p1062_p3, %p164_p4 }
  0x1f   : > { %s170_s23 = sand.u32 (!%p165_p5), 1, %s1649_s13  }
  0x20   : > { %168 = sbr.rel (%p165_p5) target bundleno = 280 (0x118), region = 32  ;;  %s171_s26 = scalar_lea.sflag (!%p165_p5), [#allocation3], %s170_s23 }
  0x21   : > { %s1550_s24 = smul.u32 (!%p165_p5), 768, %s170_s23 }
  0x23   : > { %s1743_s27 = scalar_lea.vmem (!%p165_p5), [#allocation2], %s1550_s24 }
  0x25   : > { %1640 = dma.done.wait (%p1717_p7), %s171_s26, 12288  }
  0x26   : > { %1642 = vsyncadd (%p1717_p7), %s171_s26, 4294955008  ;;  %v1124_v0 = vld [vmem:[%s1743_s27 + $0x70] sm:$0xf]  ;;  %v1468_v1 = vld [vmem:[%s1743_s27 + $0x74] sm:$0xf0]  ;;  %s1063_s30 = sshll.u32 %s1056_s16, 1 }
  0x27   : > { %v1188_v2 = vld [vmem:[%s1743_s27 + $0xf0] sm:$0xf]  ;;  %v1125_v3 = vor.u32 %v1468_v1, %v1124_v0  ;;  %v1484_v4 = vld [vmem:[%s1743_s27 + $0xf4] sm:$0xf0]  ;;  %v1116_v11 = vld [vmem:[%s1743_s27 + $0x60] sm:$0xf] }
  0x28   : > { %v1252_v5 = vld [vmem:[%s1743_s27 + $0x170] sm:$0xf]  ;;  %v1500_v6 = vld [vmem:[%s1743_s27 + $0x174] sm:$0xf0]  ;;  %v1189_v7 = vor.u32 %v1484_v4, %v1188_v2  ;;  %v1466_v13 = vld [vmem:[%s1743_s27 + $0x64] sm:$0xf0] }
  0x29   : > { %v1253_v8 = vor.u32 %v1500_v6, %v1252_v5  ;;  %v1316_v9 = vld [vmem:[%s1743_s27 + $0x1f0] sm:$0xf]  ;;  %v1516_v10 = vld [vmem:[%s1743_s27 + $0x1f4] sm:$0xf0]  ;;  %810 = vmatpush.bf16.msra.mxu0 %v1125_v3  ;;  %v1180_v14 = vld [vmem:[%s1743_s27 + $0xe0] sm:$0xf]  ;;  %v1117_v16 = vor.u32 %v1466_v13, %v1116_v11 }
  0x2a   : > { %v1317_v12 = vor.u32 %v1516_v10, %v1316_v9  ;;  %v1482_v15 = vld [vmem:[%s1743_s27 + $0xe4] sm:$0xf0]  ;;  %823 = vmatpush.bf16.msra.mxu1 %v1189_v7  ;;  %v1244_v18 = vld [vmem:[%s1743_s27 + $0x160] sm:$0xf]  ;;  %v1108_v23 = vld [vmem:[%s1743_s27 + $0x50] sm:$0xf] }
  0x2b   : > { %836 = vmatpush.bf16.msra.mxu2 %v1253_v8  ;;  %v1181_v17 = vor.u32 %v1482_v15, %v1180_v14  ;;  %v1498_v19 = vld [vmem:[%s1743_s27 + $0x164] sm:$0xf0]  ;;  %v1308_v20 = vld [vmem:[%s1743_s27 + $0x1e0] sm:$0xf]  ;;  %v1464_v24 = vld [vmem:[%s1743_s27 + $0x54] sm:$0xf0] }
  0x2c   : > { %849 = vmatpush.bf16.msra.mxu3 %v1317_v12  ;;  %v1245_v21 = vor.u32 %v1498_v19, %v1244_v18  ;;  %v1514_v22 = vld [vmem:[%s1743_s27 + $0x1e4] sm:$0xf0]  ;;  %v1172_v26 = vld [vmem:[%s1743_s27 + $0xd0] sm:$0xf]  ;;  %v1480_v27 = vld [vmem:[%s1743_s27 + $0xd4] sm:$0xf0]  ;;  %v1109_v29 = vor.u32 %v1464_v24, %v1108_v23 }
  0x2d   : > { %v1309_v25 = vor.u32 %v1514_v22, %v1308_v20  ;;  %v1236_v28 = vld [vmem:[%s1743_s27 + $0x150] sm:$0xf]  ;;  %811 = vmatpush.bf16.msra.mxu0 %v1117_v16  ;;  %v1496_v30 = vld [vmem:[%s1743_s27 + $0x154] sm:$0xf0]  ;;  %v1173_v33 = vor.u32 %v1480_v27, %v1172_v26  ;;  %v1100_v35 = vld [vmem:[%s1743_s27 + $0x40] sm:$0xf] }
  0x2e   : > { %v1300_v31 = vld [vmem:[%s1743_s27 + $0x1d0] sm:$0xf]  ;;  %v1512_v32 = vld [vmem:[%s1743_s27 + $0x1d4] sm:$0xf0]  ;;  %824 = vmatpush.bf16.msra.mxu1 %v1181_v17  ;;  %v1237_v34 = vor.u32 %v1496_v30, %v1236_v28  ;;  %v1462_v36 = vld [vmem:[%s1743_s27 + $0x44] sm:$0xf0] }
  0x2f   : > { %837 = vmatpush.bf16.msra.mxu2 %v1245_v21  ;;  %v1164_v37 = vld [vmem:[%s1743_s27 + $0xc0] sm:$0xf]  ;;  %v1301_v38 = vor.u32 %v1512_v32, %v1300_v31  ;;  %v1478_v39 = vld [vmem:[%s1743_s27 + $0xc4] sm:$0xf0]  ;;  %v1101_v44 = vor.u32 %v1462_v36, %v1100_v35  ;;  %v1092_v47 = vld [vmem:[%s1743_s27 + $0x30] sm:$0xf] }
  0x30   : > { %850 = vmatpush.bf16.msra.mxu3 %v1309_v25  ;;  %v1228_v40 = vld [vmem:[%s1743_s27 + $0x140] sm:$0xf]  ;;  %v1494_v41 = vld [vmem:[%s1743_s27 + $0x144] sm:$0xf0]  ;;  %v1165_v45 = vor.u32 %v1478_v39, %v1164_v37  ;;  %v1460_v48 = vld [vmem:[%s1743_s27 + $0x34] sm:$0xf0] }
  0x31   : > { %v1292_v42 = vld [vmem:[%s1743_s27 + $0x1c0] sm:$0xf]  ;;  %v1510_v43 = vld [vmem:[%s1743_s27 + $0x1c4] sm:$0xf0]  ;;  %812 = vmatpush.bf16.msra.mxu0 %v1109_v29  ;;  %v1229_v46 = vor.u32 %v1494_v41, %v1228_v40  ;;  %v1156_v49 = vld [vmem:[%s1743_s27 + $0xb0] sm:$0xf]  ;;  %v1093_v56 = vor.u32 %v1460_v48, %v1092_v47 }
  0x32   : > { %825 = vmatpush.bf16.msra.mxu1 %v1173_v33  ;;  %v1293_v50 = vor.u32 %v1510_v43, %v1292_v42  ;;  %v1476_v51 = vld [vmem:[%s1743_s27 + $0xb4] sm:$0xf0]  ;;  %v1220_v52 = vld [vmem:[%s1743_s27 + $0x130] sm:$0xf]  ;;  %v1084_v59 = vld [vmem:[%s1743_s27 + $0x20] sm:$0xf] }
  0x33   : > { %838 = vmatpush.bf16.msra.mxu2 %v1237_v34  ;;  %v1492_v53 = vld [vmem:[%s1743_s27 + $0x134] sm:$0xf0]  ;;  %v1284_v54 = vld [vmem:[%s1743_s27 + $0x1b0] sm:$0xf]  ;;  %v1157_v57 = vor.u32 %v1476_v51, %v1156_v49  ;;  %v1458_v60 = vld [vmem:[%s1743_s27 + $0x24] sm:$0xf0] }
  0x34   : > { %851 = vmatpush.bf16.msra.mxu3 %v1301_v38  ;;  %v1508_v55 = vld [vmem:[%s1743_s27 + $0x1b4] sm:$0xf0]  ;;  %v1221_v58 = vor.u32 %v1492_v53, %v1220_v52  ;;  %v1148_v61 = vld [vmem:[%s1743_s27 + $0xa0] sm:$0xf]  ;;  %v1474_v63 = vld [vmem:[%s1743_s27 + $0xa4] sm:$0xf0]  ;;  %v1085_v4 = vor.u32 %v1458_v60, %v1084_v59 }
  0x35   : > { %813 = vmatpush.bf16.msra.mxu0 %v1101_v44  ;;  %v1285_v62 = vor.u32 %v1508_v55, %v1284_v54  ;;  %v1212_v0 = vld [vmem:[%s1743_s27 + $0x120] sm:$0xf]  ;;  %v1490_v1 = vld [vmem:[%s1743_s27 + $0x124] sm:$0xf0]  ;;  %v1149_v5 = vor.u32 %v1474_v63, %v1148_v61  ;;  %v1076_v7 = vld [vmem:[%s1743_s27 + $0x10] sm:$0xf] }
  0x36   : > { %826 = vmatpush.bf16.msra.mxu1 %v1165_v45  ;;  %v1276_v2 = vld [vmem:[%s1743_s27 + $0x1a0] sm:$0xf]  ;;  %v1506_v3 = vld [vmem:[%s1743_s27 + $0x1a4] sm:$0xf0]  ;;  %v1213_v6 = vor.u32 %v1490_v1, %v1212_v0  ;;  %v1456_v8 = vld [vmem:[%s1743_s27 + $0x14] sm:$0xf0] }
  0x37   : > { %839 = vmatpush.bf16.msra.mxu2 %v1229_v46  ;;  %v1140_v9 = vld [vmem:[%s1743_s27 + $0x90] sm:$0xf]  ;;  %v1277_v10 = vor.u32 %v1506_v3, %v1276_v2  ;;  %v1472_v11 = vld [vmem:[%s1743_s27 + $0x94] sm:$0xf0]  ;;  %v1077_v16 = vor.u32 %v1456_v8, %v1076_v7  ;;  %v1068_v17 = vld [vmem:[%s1743_s27] sm:$0xf] }
  0x38   : > { %852 = vmatpush.bf16.msra.mxu3 %v1293_v50  ;;  %v1204_v12 = vld [vmem:[%s1743_s27 + $0x110] sm:$0xf]  ;;  %v1488_v13 = vld [vmem:[%s1743_s27 + $0x114] sm:$0xf0]  ;;  %v1454_v18 = vld [vmem:[%s1743_s27 + $0x4] sm:$0xf0]  ;;  %v1141_v19 = vor.u32 %v1472_v11, %v1140_v9 }
  0x39   : > { %814 = vmatpush.bf16.msra.mxu0 %v1093_v56  ;;  %v1268_v14 = vld [vmem:[%s1743_s27 + $0x190] sm:$0xf]  ;;  %v1504_v15 = vld [vmem:[%s1743_s27 + $0x194] sm:$0xf0]  ;;  %v1205_v20 = vor.u32 %v1488_v13, %v1204_v12  ;;  %v1132_v21 = vld [vmem:[%s1743_s27 + $0x80] sm:$0xf]  ;;  %v1069_v31 = vor.u32 %v1454_v18, %v1068_v17 }
  0x3a   : > { %827 = vmatpush.bf16.msra.mxu1 %v1157_v57  ;;  %v1470_v22 = vld [vmem:[%s1743_s27 + $0x84] sm:$0xf0]  ;;  %v1196_v23 = vld [vmem:[%s1743_s27 + $0x100] sm:$0xf]  ;;  %v1269_v24 = vor.u32 %v1504_v15, %v1268_v14  ;;  %v1380_v28 = vld [vmem:[%s1743_s27 + $0x270] sm:$0xf] }
  0x3b   : > { %840 = vmatpush.bf16.msra.mxu2 %v1221_v58  ;;  %v1486_v25 = vld [vmem:[%s1743_s27 + $0x104] sm:$0xf0]  ;;  %v1260_v26 = vld [vmem:[%s1743_s27 + $0x180] sm:$0xf]  ;;  %v1532_v29 = vld [vmem:[%s1743_s27 + $0x274] sm:$0xf0]  ;;  %v1133_v35 = vor.u32 %v1470_v22, %v1132_v21 }
  0x3c   : > { %853 = vmatpush.bf16.msra.mxu3 %v1285_v62  ;;  %v1502_v27 = vld [vmem:[%s1743_s27 + $0x184] sm:$0xf0]  ;;  %v1444_v30 = vld [vmem:[%s1743_s27 + $0x2f0] sm:$0xf]  ;;  %v1548_v32 = vld [vmem:[%s1743_s27 + $0x2f4] sm:$0xf0]  ;;  %v1197_v36 = vor.u32 %v1486_v25, %v1196_v23  ;;  %v1381_v40 = vor.u32 %v1532_v29, %v1380_v28 }
  0x3d   : > { %815 = vmatpush.bf16.msra.mxu0 %v1085_v4  ;;  %v1467_v33 = vld [vmem:[%s1743_s27 + $0x74] sm:$0xf]  ;;  %v1126_v34 = vld [vmem:[%s1743_s27 + $0x78] sm:$0xf0]  ;;  %v1261_v39 = vor.u32 %v1502_v27, %v1260_v26  ;;  %v1445_v41 = vor.u32 %v1548_v32, %v1444_v30  ;;  %v1372_v43 = vld [vmem:[%s1743_s27 + $0x260] sm:$0xf] }
  0x3e   : > { %828 = vmatpush.bf16.msra.mxu1 %v1149_v5  ;;  %v1483_v37 = vld [vmem:[%s1743_s27 + $0xf4] sm:$0xf]  ;;  %v1190_v38 = vld [vmem:[%s1743_s27 + $0xf8] sm:$0xf0]  ;;  %v1129_v42 = vor.u32 %v1467_v33, %v1126_v34  ;;  %v1530_v44 = vld [vmem:[%s1743_s27 + $0x264] sm:$0xf0] }
  0x3f   : > { %841 = vmatpush.bf16.msra.mxu2 %v1213_v6  ;;  %v1436_v45 = vld [vmem:[%s1743_s27 + $0x2e0] sm:$0xf]  ;;  %v1193_v46 = vor.u32 %v1483_v37, %v1190_v38  ;;  %v1546_v47 = vld [vmem:[%s1743_s27 + $0x2e4] sm:$0xf0]  ;;  %v1465_v48 = vld [vmem:[%s1743_s27 + $0x64] sm:$0xf]  ;;  %v1373_v52 = vor.u32 %v1530_v44, %v1372_v43 }
  0x40   : > { %854 = vmatpush.bf16.msra.mxu3 %v1277_v10  ;;  %v1118_v49 = vld [vmem:[%s1743_s27 + $0x68] sm:$0xf0]  ;;  %v1481_v50 = vld [vmem:[%s1743_s27 + $0xe4] sm:$0xf]  ;;  %v1364_v53 = vld [vmem:[%s1743_s27 + $0x250] sm:$0xf]  ;;  %v1437_v55 = vor.u32 %v1546_v47, %v1436_v45 }
  0x41   : > { %816 = vmatpush.bf16.msra.mxu0 %v1077_v16  ;;  %v1182_v51 = vld [vmem:[%s1743_s27 + $0xe8] sm:$0xf0]  ;;  %v1528_v54 = vld [vmem:[%s1743_s27 + $0x254] sm:$0xf0]  ;;  %v1121_v56 = vor.u32 %v1465_v48, %v1118_v49  ;;  %v1428_v57 = vld [vmem:[%s1743_s27 + $0x2d0] sm:$0xf] }
  0x42   : > { %829 = vmatpush.bf16.msra.mxu1 %v1141_v19  ;;  %v1544_v58 = vld [vmem:[%s1743_s27 + $0x2d4] sm:$0xf0]  ;;  %v1185_v60 = vor.u32 %v1481_v50, %v1182_v51  ;;  %v1463_v61 = vld [vmem:[%s1743_s27 + $0x54] sm:$0xf]  ;;  %v1110_v62 = vld [vmem:[%s1743_s27 + $0x58] sm:$0xf0]  ;;  %v1365_v1 = vor.u32 %v1528_v54, %v1364_v53 }
  0x43   : > { %842 = vmatpush.bf16.msra.mxu2 %v1205_v20  ;;  %v215_v59 = vld [vmem:[%s1992_s0] sm:$0xff]  ;;  %v1479_v63 = vld [vmem:[%s1743_s27 + $0xd4] sm:$0xf]  ;;  %v1356_v2 = vld [vmem:[%s1743_s27 + $0x240] sm:$0xf]  ;;  %v1429_v3 = vor.u32 %v1544_v58, %v1428_v57  ;;  %v1113_v4 = vor.u32 %v1463_v61, %v1110_v62  ;;  %p204_p6 = scmp.lt.s32.totalorder %s1063_s30, 3 }
  0x44   : > { %855 = vmatpush.bf16.msra.mxu3 %v1269_v24  ;;  %314 = vst [vmem:[#allocation1] ss:$4 sm:$0xff] %v215_v59  ;;  %v1174_v0 = vld [vmem:[%s1743_s27 + $0xd8] sm:$0xf0]  ;;  %v1526_v5 = vld [vmem:[%s1743_s27 + $0x244] sm:$0xf0] }
  0x45   : > { %817 = vmatpush.bf16.msra.mxu0 %v1069_v31  ;;  %v1420_v6 = vld [vmem:[%s1743_s27 + $0x2c0] sm:$0xf]  ;;  %v1542_v7 = vld [vmem:[%s1743_s27 + $0x2c4] sm:$0xf0]  ;;  %v1177_v8 = vor.u32 %v1479_v63, %v1174_v0  ;;  %v1461_v9 = vld [vmem:[%s1743_s27 + $0x44] sm:$0xf]  ;;  %v1357_v15 = vor.u32 %v1526_v5, %v1356_v2 }
  0x46   : > { %830 = vmatpush.bf16.msra.mxu1 %v1133_v35  ;;  %v1102_v10 = vld [vmem:[%s1743_s27 + $0x48] sm:$0xf0]  ;;  %v1477_v11 = vld [vmem:[%s1743_s27 + $0xc4] sm:$0xf]  ;;  %v1348_v13 = vld [vmem:[%s1743_s27 + $0x230] sm:$0xf]  ;;  %v1421_v20 = vor.u32 %v1542_v7, %v1420_v6 }
  0x47   : > { %843 = vmatpush.bf16.msra.mxu2 %v1197_v36  ;;  %v1166_v12 = vld [vmem:[%s1743_s27 + $0xc8] sm:$0xf0]  ;;  %v1524_v14 = vld [vmem:[%s1743_s27 + $0x234] sm:$0xf0]  ;;  %v1412_v16 = vld [vmem:[%s1743_s27 + $0x2b0] sm:$0xf]  ;;  %v1105_v21 = vor.u32 %v1461_v9, %v1102_v10 }
  0x48   : > { %856 = vmatpush.bf16.msra.mxu3 %v1261_v39  ;;  %v1540_v17 = vld [vmem:[%s1743_s27 + $0x2b4] sm:$0xf0]  ;;  %v1459_v18 = vld [vmem:[%s1743_s27 + $0x34] sm:$0xf]  ;;  %v1094_v19 = vld [vmem:[%s1743_s27 + $0x38] sm:$0xf0]  ;;  %v1169_v24 = vor.u32 %v1477_v11, %v1166_v12  ;;  %v1349_v29 = vor.u32 %v1524_v14, %v1348_v13 }
  0x49   : > { %862 = vmatpush.bf16.msrb.mxu0 %v1381_v40  ;;  %v1475_v27 = vld [vmem:[%s1743_s27 + $0xb4] sm:$0xf]  ;;  %v1158_v28 = vld [vmem:[%s1743_s27 + $0xb8] sm:$0xf0]  ;;  %v1413_v30 = vor.u32 %v1540_v17, %v1412_v16  ;;  %v1097_v31 = vor.u32 %v1459_v18, %v1094_v19  ;;  %v1340_v32 = vld [vmem:[%s1743_s27 + $0x220] sm:$0xf] }
  0x4a   : > { %875 = vmatpush.bf16.msrb.mxu1 %v1445_v41  ;;  %v1522_v33 = vld [vmem:[%s1743_s27 + $0x224] sm:$0xf0]  ;;  %v1404_v34 = vld [vmem:[%s1743_s27 + $0x2a0] sm:$0xf]  ;;  %v1161_v35 = vor.u32 %v1475_v27, %v1158_v28  ;;  %v1457_v37 = vld [vmem:[%s1743_s27 + $0x24] sm:$0xf] }
  0x4b   : > { %888 = vmatpush.bf16.msrb.mxu2 %v1129_v42  ;;  %v1854_v22 = vld.sshfl [vmem:[#allocation1] sm:$0xff pattern:$0x73625140]  ;;  %v1856_v23 = vld.sshfl [vmem:[#allocation1 + $0x10] sm:$0xff pattern:$0x73625140]  ;;  %v1341_v41 = vor.u32 %v1522_v33, %v1340_v32 }
  0x4c   : > { %901 = vmatpush.bf16.msrb.mxu3 %v1193_v46  ;;  %818 = vmatmul.bf16.vlgmr.msra.gmra.mxu0 %v1854_v22  ;;  %v1859_v25 = vld.sshfl [vmem:[#allocation1 + $0x8] sm:$0xff pattern:$0x73625140]  ;;  %v1861_v26 = vld.sshfl [vmem:[#allocation1 + $0x18] sm:$0xff pattern:$0x73625140] }
  0x4d   : > { %863 = vmatpush.bf16.msrb.mxu0 %v1373_v52  ;;  %844 = vmatmul.bf16.vlgmr.msra.gmra.mxu2 %v1856_v23  ;;  %v1538_v36 = vld [vmem:[%s1743_s27 + $0x2a4] sm:$0xf0]  ;;  %v1086_v38 = vld [vmem:[%s1743_s27 + $0x28] sm:$0xf0]  ;;  %v1473_v39 = vld [vmem:[%s1743_s27 + $0xa4] sm:$0xf] }
  0x4e   : > { %876 = vmatpush.bf16.msrb.mxu1 %v1437_v55  ;;  %857 = vmatmul.bf16.vlgmr.msra.gmra.mxu3 %v1861_v26  ;;  %v1150_v40 = vld [vmem:[%s1743_s27 + $0xa8] sm:$0xf0]  ;;  %v1332_v42 = vld [vmem:[%s1743_s27 + $0x210] sm:$0xf]  ;;  %v1520_v43 = vld [vmem:[%s1743_s27 + $0x214] sm:$0xf0]  ;;  %v1405_v44 = vor.u32 %v1538_v36, %v1404_v34  ;;  %v1089_v45 = vor.u32 %v1457_v37, %v1086_v38 }
  0x4f   : > { %889 = vmatpush.bf16.msrb.mxu2 %v1121_v56  ;;  %831 = vmatmul.bf16.vlgmr.msra.gmra.mxu1 %v1859_v25  ;;  %v1396_v46 = vld [vmem:[%s1743_s27 + $0x290] sm:$0xf]  ;;  %v1536_v47 = vld [vmem:[%s1743_s27 + $0x294] sm:$0xf0]  ;;  %v216_v48 = vld [vmem:[%s1992_s0 + $0x8] sm:$0xf]  ;;  %v1153_v49 = vor.u32 %v1473_v39, %v1150_v40  ;;  %v1333_v54 = vor.u32 %v1520_v43, %v1332_v42 }
  0x50   : > { %902 = vmatpush.bf16.msrb.mxu3 %v1185_v60  ;;  %v1455_v50 = vld [vmem:[%s1743_s27 + $0x14] sm:$0xf]  ;;  %v1078_v51 = vld [vmem:[%s1743_s27 + $0x18] sm:$0xf0]  ;;  %317 = vst [vmem:[#allocation1 + $0x20] ss:$4 sm:$0xff] %v216_v48  ;;  %v1397_v57 = vor.u32 %v1536_v47, %v1396_v46 }
  0x51   : > { %864 = vmatpush.bf16.msrb.mxu0 %v1365_v1  ;;  %v1471_v52 = vld [vmem:[%s1743_s27 + $0x94] sm:$0xf]  ;;  %v1142_v53 = vld [vmem:[%s1743_s27 + $0x98] sm:$0xf0]  ;;  %v1324_v55 = vld [vmem:[%s1743_s27 + $0x200] sm:$0xf]  ;;  %v1081_v58 = vor.u32 %v1455_v50, %v1078_v51 }
  0x52   : > { %877 = vmatpush.bf16.msrb.mxu1 %v1429_v3  ;;  %v1518_v56 = vld [vmem:[%s1743_s27 + $0x204] sm:$0xf0]  ;;  %v1388_v59 = vld [vmem:[%s1743_s27 + $0x280] sm:$0xf]  ;;  %v1453_v61 = vld [vmem:[%s1743_s27 + $0x4] sm:$0xf]  ;;  %v1145_v62 = vor.u32 %v1471_v52, %v1142_v53 }
  0x53   : > { %890 = vmatpush.bf16.msrb.mxu2 %v1113_v4  ;;  %v1534_v60 = vld [vmem:[%s1743_s27 + $0x284] sm:$0xf0]  ;;  %v1070_v63 = vld [vmem:[%s1743_s27 + $0x8] sm:$0xf0]  ;;  %v1469_v0 = vld [vmem:[%s1743_s27 + $0x84] sm:$0xf]  ;;  %v1325_v5 = vor.u32 %v1518_v56, %v1324_v55 }
  0x54   : > { %903 = vmatpush.bf16.msrb.mxu3 %v1177_v8  ;;  %v1134_v1 = vld [vmem:[%s1743_s27 + $0x88] sm:$0xf0]  ;;  %v1499_v2 = vld [vmem:[%s1743_s27 + $0x174] sm:$0xf]  ;;  %v1254_v3 = vld [vmem:[%s1743_s27 + $0x178] sm:$0xf0]  ;;  %v1389_v9 = vor.u32 %v1534_v60, %v1388_v59  ;;  %v1073_v10 = vor.u32 %v1453_v61, %v1070_v63 }
  0x55   : > { %865 = vmatpush.bf16.msrb.mxu0 %v1357_v15  ;;  %v1515_v4 = vld [vmem:[%s1743_s27 + $0x1f4] sm:$0xf]  ;;  %v1318_v6 = vld [vmem:[%s1743_s27 + $0x1f8] sm:$0xf0]  ;;  %v1137_v13 = vor.u32 %v1469_v0, %v1134_v1  ;;  %v1257_v14 = vor.u32 %v1499_v2, %v1254_v3  ;;  %v1497_v15 = vld [vmem:[%s1743_s27 + $0x164] sm:$0xf] }
  0x56   : > { %878 = vmatpush.bf16.msrb.mxu1 %v1421_v20  ;;  %v1531_v7 = vld [vmem:[%s1743_s27 + $0x274] sm:$0xf]  ;;  %v1382_v8 = vld [vmem:[%s1743_s27 + $0x278] sm:$0xf0]  ;;  %v1321_v16 = vor.u32 %v1515_v4, %v1318_v6  ;;  %v1246_v18 = vld [vmem:[%s1743_s27 + $0x168] sm:$0xf0] }
  0x57   : > { %891 = vmatpush.bf16.msrb.mxu2 %v1105_v21  ;;  %v1547_v11 = vld [vmem:[%s1743_s27 + $0x2f4] sm:$0xf]  ;;  %v1446_v12 = vld [vmem:[%s1743_s27 + $0x2f8] sm:$0xf0]  ;;  %v1385_v17 = vor.u32 %v1531_v7, %v1382_v8  ;;  %v1513_v19 = vld [vmem:[%s1743_s27 + $0x1e4] sm:$0xf] }
  0x58   : > { %904 = vmatpush.bf16.msrb.mxu3 %v1169_v24  ;;  %v1310_v20 = vld [vmem:[%s1743_s27 + $0x1e8] sm:$0xf0]  ;;  %v1449_v21 = vor.u32 %v1547_v11, %v1446_v12  ;;  %v1529_v24 = vld [vmem:[%s1743_s27 + $0x264] sm:$0xf]  ;;  %v1238_v36 = vld [vmem:[%s1743_s27 + $0x158] sm:$0xf0] }
  0x59   : > { %866 = vmatpush.bf16.msrb.mxu0 %v1349_v29  ;;  %v1374_v27 = vld [vmem:[%s1743_s27 + $0x268] sm:$0xf0]  ;;  %v1545_v28 = vld [vmem:[%s1743_s27 + $0x2e4] sm:$0xf]  ;;  %v1313_v33 = vor.u32 %v1513_v19, %v1310_v20  ;;  %v1511_v37 = vld [vmem:[%s1743_s27 + $0x1d4] sm:$0xf] }
  0x5a   : > { %879 = vmatpush.bf16.msrb.mxu1 %v1413_v30  ;;  %v1438_v29 = vld [vmem:[%s1743_s27 + $0x2e8] sm:$0xf0]  ;;  %v1911_v30 = vld.sshfl [vmem:[#allocation1 + $0x20] sm:$0xff pattern:$0x73625140]  ;;  %v1377_v34 = vor.u32 %v1529_v24, %v1374_v27  ;;  %s2003_s30 = smov (!%p204_p6, %s1063_s30), 3 }
  0x5b   : > { %892 = vmatpush.bf16.msrb.mxu2 %v1097_v31  ;;  %v1249_v31 = vor.u32 %v1497_v15, %v1246_v18  ;;  %v1913_v32 = vld.sshfl [vmem:[#allocation1 + $0x28] sm:$0xff pattern:$0x73625140]  ;;  %v1441_v38 = vor.u32 %v1545_v28, %v1438_v29  ;;  %v1302_v39 = vld [vmem:[%s1743_s27 + $0x1d8] sm:$0xf0]  ;;  %s206_s6 = scalar_lea.vmem %s1994_s2, %s2003_s30  ;;  %s1065_s15 = sshll.u32 %s2003_s30, 2 }
  0x5c   : > { %905 = vmatpush.bf16.msrb.mxu3 %v1161_v35  ;;  %v1495_v35 = vld [vmem:[%s1743_s27 + $0x154] sm:$0xf]  ;;  %v1430_v43 = vld [vmem:[%s1743_s27 + $0x2d8] sm:$0xf0]  ;;  %v1493_v47 = vld [vmem:[%s1743_s27 + $0x144] sm:$0xf]  ;;  %s212_s8 = scalar_lea.vmem %s1995_s3, %s1065_s15 }
  0x5d   : > { %867 = vmatpush.bf16.msrb.mxu0 %v1341_v41  ;;  %v1527_v40 = vld [vmem:[%s1743_s27 + $0x254] sm:$0xf]  ;;  %v1366_v41 = vld [vmem:[%s1743_s27 + $0x258] sm:$0xf0]  ;;  %v1509_v48 = vld [vmem:[%s1743_s27 + $0x1c4] sm:$0xf] }
  0x5e   : > { %880 = vmatpush.bf16.msrb.mxu1 %v1405_v44  ;;  %v1543_v42 = vld [vmem:[%s1743_s27 + $0x2d4] sm:$0xf]  ;;  %v1241_v44 = vor.u32 %v1495_v35, %v1238_v36  ;;  %v1369_v46 = vor.u32 %v1527_v40, %v1366_v41  ;;  %v1294_v50 = vld [vmem:[%s1743_s27 + $0x1c8] sm:$0xf0]  ;;  %v1525_v51 = vld [vmem:[%s1743_s27 + $0x244] sm:$0xf] }
  0x5f   : > { %893 = vmatpush.bf16.msrb.mxu2 %v1089_v45  ;;  %v1305_v45 = vor.u32 %v1511_v37, %v1302_v39  ;;  %v1358_v52 = vld [vmem:[%s1743_s27 + $0x248] sm:$0xf0]  ;;  %v1541_v53 = vld [vmem:[%s1743_s27 + $0x2c4] sm:$0xf]  ;;  %v1297_v55 = vor.u32 %v1509_v48, %v1294_v50  ;;  %v1507_v59 = vld [vmem:[%s1743_s27 + $0x1b4] sm:$0xf] }
  0x60   : > { %906 = vmatpush.bf16.msrb.mxu3 %v1153_v49  ;;  %v1433_v49 = vor.u32 %v1543_v42, %v1430_v43  ;;  %v1361_v56 = vor.u32 %v1525_v51, %v1358_v52  ;;  %v1286_v61 = vld [vmem:[%s1743_s27 + $0x1b8] sm:$0xf0]  ;;  %v1539_v0 = vld [vmem:[%s1743_s27 + $0x2b4] sm:$0xf]  ;;  %v1214_v6 = vld [vmem:[%s1743_s27 + $0x128] sm:$0xf0] }
  0x61   : > { %868 = vmatpush.bf16.msrb.mxu0 %v1333_v54  ;;  %v1350_v63 = vld [vmem:[%s1743_s27 + $0x238] sm:$0xf0]  ;;  %v1289_v3 = vor.u32 %v1507_v59, %v1286_v61  ;;  %v1505_v7 = vld [vmem:[%s1743_s27 + $0x1a4] sm:$0xf]  ;;  %v1342_v11 = vld [vmem:[%s1743_s27 + $0x228] sm:$0xf0] }
  0x62   : > { %881 = vmatpush.bf16.msrb.mxu1 %v1397_v57  ;;  %v1491_v57 = vld [vmem:[%s1743_s27 + $0x134] sm:$0xf]  ;;  %v1414_v1 = vld [vmem:[%s1743_s27 + $0x2b8] sm:$0xf0]  ;;  %v1537_v12 = vld [vmem:[%s1743_s27 + $0x2a4] sm:$0xf] }
  0x63   : > { %894 = vmatpush.bf16.msrb.mxu2 %v1081_v58  ;;  %v1222_v58 = vld [vmem:[%s1743_s27 + $0x138] sm:$0xf0]  ;;  %v1417_v8 = vor.u32 %v1539_v0, %v1414_v1  ;;  %v1503_v19 = vld [vmem:[%s1743_s27 + $0x194] sm:$0xf]  ;;  %v1485_v35 = vld [vmem:[%s1743_s27 + $0x104] sm:$0xf] }
  0x64   : > { %907 = vmatpush.bf16.msrb.mxu3 %v1145_v62  ;;  %v1523_v62 = vld [vmem:[%s1743_s27 + $0x234] sm:$0xf]  ;;  %v1225_v2 = vor.u32 %v1491_v57, %v1222_v58  ;;  %v1206_v18 = vld [vmem:[%s1743_s27 + $0x118] sm:$0xf0]  ;;  %v1198_v36 = vld [vmem:[%s1743_s27 + $0x108] sm:$0xf0] }
  0x65   : > { %869 = vmatpush.bf16.msrb.mxu0 %v1325_v5  ;;  %v1353_v4 = vor.u32 %v1523_v62, %v1350_v63  ;;  %v1489_v5 = vld [vmem:[%s1743_s27 + $0x124] sm:$0xf]  ;;  %v1519_v24 = vld [vmem:[%s1743_s27 + $0x214] sm:$0xf]  ;;  %v1334_v27 = vld [vmem:[%s1743_s27 + $0x218] sm:$0xf0] }
  0x66   : > { %882 = vmatpush.bf16.msrb.mxu1 %v1389_v9  ;;  %v1278_v9 = vld [vmem:[%s1743_s27 + $0x1a8] sm:$0xf0]  ;;  %v1535_v28 = vld [vmem:[%s1743_s27 + $0x294] sm:$0xf]  ;;  %v1398_v29 = vld [vmem:[%s1743_s27 + $0x298] sm:$0xf0] }
  0x67   : > { %895 = vmatpush.bf16.msrb.mxu2 %v1073_v10  ;;  %v1521_v10 = vld [vmem:[%s1743_s27 + $0x224] sm:$0xf]  ;;  %v1281_v15 = vor.u32 %v1505_v7, %v1278_v9  ;;  %v1262_v39 = vld [vmem:[%s1743_s27 + $0x188] sm:$0xf0]  ;;  %vm976_vm0 = vcmask 1043456  }
  0x68   : > { %908 = vmatpush.bf16.msrb.mxu3 %v1137_v13  ;;  %870 = vmatmul.bf16.vlgmr.msrb.gmra.mxu0 %v1911_v30  ;;  %v1406_v13 = vld [vmem:[%s1743_s27 + $0x2a8] sm:$0xf0]  ;;  %v1501_v37 = vld [vmem:[%s1743_s27 + $0x184] sm:$0xf] }
  0x69   : > { %914 = vmatpush.bf16.msra.mxu0 %v1257_v14  ;;  %883 = vmatmul.bf16.vlgmr.msrb.gmra.mxu1 %v1913_v32  ;;  %v1217_v14 = vor.u32 %v1489_v5, %v1214_v6  ;;  %v1409_v20 = vor.u32 %v1537_v12, %v1406_v13  ;;  %v1517_v40 = vld [vmem:[%s1743_s27 + $0x204] sm:$0xf]  ;;  %v1326_v41 = vld [vmem:[%s1743_s27 + $0x208] sm:$0xf0] }
  0x6a   : > { %927 = vmatpush.bf16.msra.mxu1 %v1321_v16  ;;  %896 = vmatmul.bf16.vlgmr.msrb.gmra.mxu2 %v1854_v22  ;;  %v1230_v22 = vld [vmem:[%s1743_s27 + $0x148] sm:$0xf0]  ;;  %v1345_v16 = vor.u32 %v1521_v10, %v1342_v11  ;;  %v1533_v42 = vld [vmem:[%s1743_s27 + $0x284] sm:$0xf] }
  0x6b   : > { %940 = vmatpush.bf16.msra.mxu2 %v1385_v17  ;;  %909 = vmatmul.bf16.vlgmr.msrb.gmra.mxu3 %v1859_v25  ;;  %v1422_v25 = vld [vmem:[%s1743_s27 + $0x2c8] sm:$0xf0]  ;;  %v1233_v54 = vor.u32 %v1493_v47, %v1230_v22  ;;  %v1487_v17 = vld [vmem:[%s1743_s27 + $0x114] sm:$0xf] }
  0x6c   : > { %953 = vmatpush.bf16.msra.mxu3 %v1449_v21  ;;  %v1425_v60 = vor.u32 %v1541_v53, %v1422_v25  ;;  %v1270_v21 = vld [vmem:[%s1743_s27 + $0x198] sm:$0xf0]  ;;  %v1390_v43 = vld [vmem:[%s1743_s27 + $0x288] sm:$0xf0] }
  0x6d   : > { %915 = vmatpush.bf16.msra.mxu0 %v1249_v31  ;;  %v1209_v31 = vor.u32 %v1487_v17, %v1206_v18  ;;  %v1393_v47 = vor.u32 %v1533_v42, %v1390_v43 }
  0x6e   : > { %928 = vmatpush.bf16.msra.mxu1 %v1313_v33  ;;  %v1273_v33 = vor.u32 %v1503_v19, %v1270_v21 }
  0x6f   : > { %941 = vmatpush.bf16.msra.mxu2 %v1377_v34  ;;  %v1337_v34 = vor.u32 %v1519_v24, %v1334_v27 }
  0x70   : > { %954 = vmatpush.bf16.msra.mxu3 %v1441_v38  ;;  %v1401_v38 = vor.u32 %v1535_v28, %v1398_v29 }
  0x71   : > { %916 = vmatpush.bf16.msra.mxu0 %v1241_v44  ;;  %v1201_v44 = vor.u32 %v1485_v35, %v1198_v36 }
  0x72   : > { %929 = vmatpush.bf16.msra.mxu1 %v1305_v45  ;;  %v1265_v45 = vor.u32 %v1501_v37, %v1262_v39 }
  0x73   : > { %942 = vmatpush.bf16.msra.mxu2 %v1369_v46  ;;  %v1329_v46 = vor.u32 %v1517_v40, %v1326_v41 }
  0x74   : > { %955 = vmatpush.bf16.msra.mxu3 %v1433_v49 }
  0x75   : > { %917 = vmatpush.bf16.msra.mxu0 %v1233_v54 }
  0x76   : > { %930 = vmatpush.bf16.msra.mxu1 %v1297_v55 }
  0x77   : > { %943 = vmatpush.bf16.msra.mxu2 %v1361_v56 }
  0x78   : > { %956 = vmatpush.bf16.msra.mxu3 %v1425_v60 }
  0x79   : > { %918 = vmatpush.bf16.msra.mxu0 %v1225_v2 }
  0x7a   : > { %931 = vmatpush.bf16.msra.mxu1 %v1289_v3  ;;  %v214_v3 = vld [vmem:[%s206_s6] sm:$0x3] }
  0x7b   : > { %944 = vmatpush.bf16.msra.mxu2 %v1353_v4  ;;  %v968_v7 = vperm.slane %v214_v3, 1  ;;  %v967_v11 = vperm.slane %v214_v3, 0 }
  0x7c   : > { %957 = vmatpush.bf16.msra.mxu3 %v1417_v8 }
  0x7d   : > { %919 = vmatpush.bf16.msra.mxu0 %v1217_v14 }
  0x7e   : > { %932 = vmatpush.bf16.msra.mxu1 %v1281_v15 }
  0x7f   : > { %945 = vmatpush.bf16.msra.mxu2 %v1345_v16 }
  0x80   : > { %958 = vmatpush.bf16.msra.mxu3 %v1409_v20 }
  0x81   : > { %920 = vmatpush.bf16.msra.mxu0 %v1209_v31 }
  0x82   : > { %933 = vmatpush.bf16.msra.mxu1 %v1273_v33 }
  0x83   : > { %946 = vmatpush.bf16.msra.mxu2 %v1337_v34 }
  0x84   : > { %959 = vmatpush.bf16.msra.mxu3 %v1401_v38 }
  0x85   : > { %921 = vmatpush.bf16.msra.mxu0 %v1201_v44 }
  0x86   : > { %934 = vmatpush.bf16.msra.mxu1 %v1265_v45 }
  0x87   : > { %947 = vmatpush.bf16.msra.mxu2 %v1329_v46 }
  0x88   : > { %960 = vmatpush.bf16.msra.mxu3 %v1393_v47  ;;  %922 = vmatmul.bf16.vlgmr.msra.gmra.mxu0 %v1856_v23 }
  0x89   : > { %935 = vmatmul.bf16.vlgmr.msra.gmra.mxu1 %v1861_v26 }
  0x8a   : > { %948 = vmatmul.bf16.vlgmr.msra.gmra.mxu2 %v1911_v30 }
  0x8b   : > { %961 = vmatmul.bf16.vlgmr.msra.gmra.mxu3 %v1913_v32 }
  0xc9   : > { %v819_v22 = vpop.f32.mrf.mxu0 }
  0xcc   : > { %v832_v48 = vpop.f32.mrf.mxu1 }
  0xcd   : > { %v833_v30 = vadd.f32 %v832_v48, %v819_v22 }
  0xd0   : > { %v845_v49 = vpop.f32.mrf.mxu2 }
  0xd1   : > { %v821_v50 = vpop.f32.mrf.mxu0  ;;  %v858_v51 = vpop.f32.mrf.mxu3  ;;  %v846_v32 = vadd.f32 %v845_v49, %v833_v30 }
  0xd3   : > { %v859_v63 = vadd.f32 %v858_v51, %v846_v32 }
  0xd4   : > { %v834_v52 = vpop.f32.mrf.mxu1 }
  0xd8   : > { %v847_v53 = vpop.f32.mrf.mxu2 }
  0xd9   : > { %v860_v25 = vpop.f32.mrf.mxu3 }
  0xe5   : > { %v871_v54 = vpop.f32.mrf.mxu0 }
  0xe6   : > { %v884_v55 = vpop.f32.mrf.mxu1  ;;  %v872_v1 = vadd.f32 %v871_v54, %v859_v63 }
  0xe8   : > { %v885_v10 = vadd.f32 %v884_v55, %v872_v1 }
  0xea   : > { %v971_v14 = vadd.f32 %v967_v11, %v885_v10 }
  0xed   : > { %v897_v56 = vpop.f32.mrf.mxu2  ;;  %v873_v23 = vpop.f32.mrf.mxu0 }
  0xee   : > { %v910_v57 = vpop.f32.mrf.mxu3  ;;  %v886_v58 = vpop.f32.mrf.mxu1 }
  0xef   : > { %v911_v60 = vadd.f32 %v910_v57, %v897_v56 }
  0xf5   : > { %v899_v26 = vpop.f32.mrf.mxu2 }
  0xf6   : > { %v912_v59 = vpop.f32.mrf.mxu3 }
 0x105   : > { %v923_v61 = vpop.f32.mrf.mxu0 }
 0x106   : > { %v936_v62 = vpop.f32.mrf.mxu1  ;;  %v924_v0 = vadd.f32 %v923_v61, %v911_v60 }
 0x108   : > { %v937_v2 = vadd.f32 %v936_v62, %v924_v0 }
 0x10d   : > { %v949_v4 = vpop.f32.mrf.mxu2  ;;  %v925_v8 = vpop.f32.mrf.mxu0 }
 0x10e   : > { %v950_v5 = vadd.f32 %v949_v4, %v937_v2  ;;  %v962_v6 = vpop.f32.mrf.mxu3  ;;  %v938_v9 = vpop.f32.mrf.mxu1 }
 0x110   : > { %v963_v12 = vadd.f32 %v962_v6, %v950_v5 }
 0x112   : > { %v972_v13 = vadd.f32 %v968_v7, %v963_v12 }
 0x114   : > { %v975_v15 = vrot.slane %v972_v13, 4 }
 0x115   : > { %v951_v16 = vpop.f32.mrf.mxu2 }
 0x116   : > { %v977_v17 = vsel %vm976_vm0, %v971_v14, %v975_v15  ;;  %v964_v18 = vpop.f32.mrf.mxu3 }
 0x117   : > { %979 = vst [vmem:[%s212_s8] sm:$0xff] %v977_v17 }
 0x118 PF: > { %p13_p7 = scmp.ge.s32.totalorder %s1702_s17, 4   ;;  %s1998_s12 = smov %s1649_s13 }
 0x119   : > { %s1999_s13 = smov %s1653_s14  ;;  %s2000_s14 = smov %s1712_s20 }
 0x11a   : > { %s2001_s15 = smov %s1702_s17  ;;  %15 = sbr.rel (!%p13_p7) target bundleno = 3 (0x3), region = 76 }
 0x11f   :  { %1002 = vsyncpa [#allocation3], 1 }
 0x120   :  { %1004 = vsyncpa [#allocation3 + $0x1], 1 }

</bundles_post_ra>
